<compile_context>
chip_gen: v6e
topology: v6e:2x2x1
jax: 0.10.0
libtpu: 0.0.40
codegen_flags: <defaults>
</compile_context>

<pallas_src>
import functools

import jax
import jax.numpy as jnp
import numpy as np
from jax import lax
from jax.experimental import pallas as pl
from jax.experimental.pallas import tpu as pltpu

# Synthetic garment-type vocabulary (the original GARMENT_TYPE global is not
# part of the provided module; 4 deterministic types chosen in-script).
GARMENT_TYPE = ("upper", "lower", "dress", "outer")
_TYPE_LANES = 128  # lane-dense padding of the per-type accumulator


def _l2_acc_kernel(idx_ref, type_ref, pred_ref, label_ref, out_ref, *,
                   num_types):
    """One (batch_tile, N_tile) block per grid step.

    idx_ref   : VMEM int32 [b_tile, G+1]       segment boundaries per outfit
    type_ref  : VMEM int32 [b_tile, G]         argmax garment type per segment
    pred_ref  : VMEM bf16  [D, b_tile, N_tile] coords on leading axis (each
    label_ref : VMEM bf16  [D, b_tile, N_tile]  [b_tile, N_tile] slab is dense)
    out_ref   : VMEM f32   [1, 1, 128]         per-type sum of segment means
                                               (accumulated across the N axis)
    """
    n_blk = pl.program_id(1)
    d_dim, b_tile, n_tile = pred_ref.shape
    num_garments = type_ref.shape[1]

    @pl.when(n_blk == 0)
    def _():
        out_ref[...] = jnp.zeros_like(out_ref)

    # Per-vertex squared L2 error over the D coords, whole batch tile at once.
    sq = jnp.zeros((b_tile, n_tile), jnp.float32)
    for d in range(d_dim):                       # D is tiny & static (=3)
        diff = (pred_ref[d].astype(jnp.float32)
                - label_ref[d].astype(jnp.float32))        # [b_tile, N_tile]
        sq = sq + diff * diff
    err = jnp.sqrt(sq)                                      # [b_tile, N_tile]

    # Global vertex positions covered by this N tile.
    pos = n_blk * n_tile + lax.broadcasted_iota(jnp.int32, (b_tile, n_tile), 1)

    # One pass over garments: build per-vertex 1/len weight and per-vertex
    # garment type for ALL outfits in the tile (segments are disjoint
    # boundary slices). G is tiny, so a static unrolled loop is fine.
    w = jnp.zeros((b_tile, n_tile), jnp.float32)
    tvec = jnp.full((b_tile, n_tile), -1, jnp.int32)
    for g in range(num_garments):
        start = idx_ref[:, g:g + 1]                         # [b_tile, 1]
        end = idx_ref[:, g + 1:g + 2]                       # [b_tile, 1]
        seg_len = (end - start).astype(jnp.float32)
        valid = (seg_len > 0.0).astype(jnp.float32)         # skip padded segs
        inv_len = valid / jnp.maximum(seg_len, 1.0)         # [b_tile, 1]
        t_col = type_ref[:, g:g + 1]                        # [b_tile, 1]
        mask = jnp.logical_and(pos >= start, pos < end)     # [b_tile, N_tile]
        w = jnp.where(mask, inv_len, w)
        tvec = jnp.where(mask, t_col, tvec)

    werr = err * w                                          # [b_tile, N_tile]

    # T(=4) full reductions -> per-type sum of segment means, placed on lanes.
    # One-hot lane masks are built once per grid step (hoisted).
    type_lanes = lax.broadcasted_iota(jnp.int32, (1, _TYPE_LANES), 1)
    t_sum = jnp.zeros((1, _TYPE_LANES), jnp.float32)
    for t in range(num_types):
        contrib = jnp.sum(jnp.where(tvec == t, werr, 0.0))
        t_sum = t_sum + contrib * (type_lanes == t).astype(jnp.float32)

    out_ref[...] += t_sum[None]


def l2_accuracy(pred, target, indices, indices_type, prefix="accuracy_l2",
                b_tile=8, n_tile=2048, ship_dtype=jnp.bfloat16,
                inputs_transposed=False):
    """Pallas implementation of accuracy_l2 / L2Accuracy.forward.

    pred, target : [bs, N, D]  (or [D, bs, N] if inputs_transposed=True)
    indices      : [bs, G+1]   int segment boundaries per outfit
    indices_type : [bs, G, T]  one-hot garment type per segment

    Note: empty (zero-length) segments are skipped instead of producing NaN
    as the PyTorch reference would — intentional, documented divergence.
    """
    if inputs_transposed:
        D, bs, N = pred.shape
    else:
        bs, N, D = pred.shape
    G = indices.shape[1] - 1
    T = len(GARMENT_TYPE)
    assert indices_type.shape == (bs, G, T)

    # --- tile-size fixups (last two dims of every block must be %(8,128) or
    # equal the full array dim) -------------------------------------------
    if bs % 8 == 0 and bs >= 8:
        b_tile = max(8, (min(b_tile, bs) // 8) * 8)
        while bs % b_tile:
            b_tile -= 8
    else:
        b_tile = bs
    if N % 128 == 0 and N >= 128:
        n_tile = max(128, (min(n_tile, N) // 128) * 128)
        while N % n_tile:
            n_tile -= 128
    else:
        n_tile = N
    num_blocks = bs // b_tile
    num_n = N // n_tile

    # --- ship bf16 in a coords-leading layout ------------------------------
    # TODO(synk): produce [D, bs, N] upstream (inputs_transposed=True) to drop
    # this extra relayout pass over the inputs.
    if inputs_transposed:
        pred_t = pred.astype(ship_dtype)
        target_t = target.astype(ship_dtype)
    else:
        pred_t = jnp.transpose(pred.astype(ship_dtype), (2, 0, 1))    # [D,bs,N]
        target_t = jnp.transpose(target.astype(ship_dtype), (2, 0, 1))

    indices = indices.astype(jnp.int32)
    # argmax of the one-hot garment type (matches torch.argmax(b_type[i-1]))
    type_idx = jnp.argmax(indices_type, axis=-1).astype(jnp.int32)    # [bs, G]

    # Per-type segment counts don't touch pred/target: plain jnp, not kernel.
    seg_valid = (indices[:, 1:] - indices[:, :-1]) > 0                # [bs, G]
    total_cnt = jnp.sum(
        jnp.where(seg_valid[..., None],
                  jax.nn.one_hot(type_idx, T, dtype=jnp.float32), 0.0),
        axis=(0, 1))                                                  # [T]

    # Explicit VMEM budget (v5e default is only 16 MiB; v7x physical is 64).
    in_bytes = 2 * 2 * D * b_tile * n_tile * jnp.dtype(ship_dtype).itemsize
    vmem_limit = int(min(max(4 * in_bytes, 16 * 1024 * 1024), 48 * 1024 * 1024))

    kernel = functools.partial(_l2_acc_kernel, num_types=T)

    out = pl.pallas_call(
        kernel,
        out_shape=jax.ShapeDtypeStruct((num_blocks, 1, _TYPE_LANES),
                                       jnp.float32),
        grid_spec=pltpu.PrefetchScalarGridSpec(
            num_scalar_prefetch=0,
            grid=(num_blocks, num_n),
            in_specs=[
                pl.BlockSpec((b_tile, G + 1), lambda i, n: (i, 0)),
                pl.BlockSpec((b_tile, G), lambda i, n: (i, 0)),
                pl.BlockSpec((D, b_tile, n_tile), lambda i, n: (0, i, n)),
                pl.BlockSpec((D, b_tile, n_tile), lambda i, n: (0, i, n)),
            ],
            out_specs=pl.BlockSpec((1, 1, _TYPE_LANES),
                                   lambda i, n: (i, 0, 0)),
        ),
        compiler_params=pltpu.CompilerParams(
            dimension_semantics=("parallel", "arbitrary"),
            vmem_limit_bytes=vmem_limit),
    )(indices, type_idx, pred_t, target_t)

    total_sum = jnp.sum(out[:, 0, :T], axis=0)                        # [T]
    # mean over all collected segment errors per type; 0 if type never seen
    per_type = jnp.where(total_cnt > 0,
                         total_sum / jnp.maximum(total_cnt, 1.0),
                         jnp.zeros_like(total_sum))
    # TODO(synk): string-keyed defaultdict assembly has no Pallas equivalent;
    # done host-side (matches the reference's zero for unseen garment types).
    return {f"{prefix}.{name}": per_type[t] for t, name in enumerate(GARMENT_TYPE)}


def _reference(pred, target, indices, indices_type, prefix="accuracy_l2"):
    """Pure-numpy re-implementation of accuracy_l2 for validation."""
    pred = np.asarray(pred, np.float32)
    target = np.asarray(target, np.float32)
    indices = np.asarray(indices)
    indices_type = np.asarray(indices_type)
    acc = {name: [] for name in GARMENT_TYPE}
    bs = pred.shape[0]
    for b in range(bs):
        err = np.sqrt(np.sum((pred[b] - target[b]) ** 2, axis=-1))
        for i in range(1, indices.shape[1]):
            g_type = GARMENT_TYPE[int(np.argmax(indices_type[b, i - 1]))]
            s, e = int(indices[b, i - 1]), int(indices[b, i])
            acc[g_type].append(float(np.mean(err[s:e])))
    out = {}
    for name in GARMENT_TYPE:
        key = f"{prefix}.{name}"
        out[key] = float(np.mean(acc[name])) if acc[name] else 0.0
    return out


if __name__ == "__main__":
    bs, N, D = 8, 256, 3          # 8 outfits, 256 padded vertices, 3-D coords
    G, T = 4, len(GARMENT_TYPE)   # 4 garments per outfit

    key = jax.random.PRNGKey(0)
    k1, k2, k3 = jax.random.split(key, 3)
    pred = jax.random.normal(k1, (bs, N, D), dtype=jnp.float32)
    target = jax.random.normal(k2, (bs, N, D), dtype=jnp.float32)

    # strictly increasing garment boundaries covering [0, N) (no empty
    # segments so the numpy reference stays NaN-free)
    rng = np.random.default_rng(0)
    rows = []
    for _ in range(bs):
        inner = np.sort(rng.choice(np.arange(1, N), size=G - 1, replace=False))
        rows.append(np.concatenate([[0], inner, [N]]))
    indices = jnp.asarray(np.stack(rows).astype(np.int32))

    # deterministic one-hot garment types per segment
    type_ids = jax.random.randint(k3, (bs, G), 0, T)
    indices_type = jax.nn.one_hot(type_ids, T, dtype=jnp.float32)

    out = l2_accuracy(pred, target, indices, indices_type, prefix="accuracy_l2")
    out = {k: jax.block_until_ready(v) for k, v in out.items()}

    # Reference is evaluated on the bf16-quantized inputs (the kernel math
    # itself is f32), so the comparison stays tight despite bf16 shipping.
    pred_q = np.asarray(pred.astype(jnp.bfloat16).astype(jnp.float32))
    target_q = np.asarray(target.astype(jnp.bfloat16).astype(jnp.float32))
    ref = _reference(pred_q, target_q, indices, indices_type,
                     prefix="accuracy_l2")
    for k in ref:
        np.testing.assert_allclose(np.asarray(out[k]), ref[k],
                                   rtol=1e-3, atol=1e-4)

    print("KERNEL_OK")
</pallas_src>

<mosaic_0001>
module attributes {stable_mosaic.version = 11 : i64} {
  func.func @_l2_acc_kernel(%arg0: i32, %arg1: i32, %arg2: memref<8x5xi32, #tpu.memory_space<vmem>>, %arg3: memref<8x4xi32, #tpu.memory_space<vmem>>, %arg4: memref<3x8x256xbf16, #tpu.memory_space<vmem>>, %arg5: memref<3x8x256xbf16, #tpu.memory_space<vmem>>, %arg6: memref<1x1x128xf32, #tpu.memory_space<vmem>>) attributes {dimension_semantics = [#tpu.dimension_semantics<parallel>, #tpu.dimension_semantics<arbitrary>], iteration_bounds = array<i64: 1, 1>, scalar_prefetch = 0 : i64, scratch_operands = 0 : i64, tpu.core_type = #tpu.core_type<tc>, window_params = [{transform_indices = @transform_0, window_bounds = array<i64: 8, 5>}, {transform_indices = @transform_1, window_bounds = array<i64: 8, 4>}, {transform_indices = @transform_2, window_bounds = array<i64: 3, 8, 256>}, {transform_indices = @transform_3, window_bounds = array<i64: 3, 8, 256>}, {transform_indices = @transform_4, window_bounds = array<i64: 1, 1, 128>}]} {
    %c0_i32 = arith.constant 0 : i32
    %0 = arith.cmpi eq, %arg1, %c0_i32 : i32
    %1 = arith.extui %0 : i1 to i32
    %c0_i32_0 = arith.constant 0 : i32
    %2 = arith.cmpi ne, %1, %c0_i32_0 : i32
    scf.if %2 {
      %cst_67 = arith.constant 0.000000e+00 : f32
      %197 = vector.broadcast %cst_67 : f32 to vector<1x1x128xf32>
      %c0_68 = arith.constant 0 : index
      %c0_69 = arith.constant 0 : index
      %c0_70 = arith.constant 0 : index
      %198 = vector.load %arg6[%c0_68, %c0_69, %c0_70] : memref<1x1x128xf32, #tpu.memory_space<vmem>>, vector<1x1x128xf32>
      tpu.vector_store %arg6[%c0_68, %c0_69, %c0_70], %197 {strides = array<i32>} : memref<1x1x128xf32, #tpu.memory_space<vmem>>, vector<1x1x128xf32>,
    } else {
    }
    %cst = arith.constant 0.000000e+00 : f32
    %3 = vector.broadcast %cst : f32 to vector<8x256xf32>
    %c0 = arith.constant 0 : index
    %c0_1 = arith.constant 0 : index
    %c0_2 = arith.constant 0 : index
    %4 = vector.load %arg4[%c0, %c0_1, %c0_2] : memref<3x8x256xbf16, #tpu.memory_space<vmem>>, vector<1x8x256xbf16>
    %5 = vector.shape_cast %4 : vector<1x8x256xbf16> to vector<8x256xbf16>
    %6 = arith.extf %5 : vector<8x256xbf16> to vector<8x256xf32>
    %c0_3 = arith.constant 0 : index
    %c0_4 = arith.constant 0 : index
    %c0_5 = arith.constant 0 : index
    %7 = vector.load %arg5[%c0_3, %c0_4, %c0_5] : memref<3x8x256xbf16, #tpu.memory_space<vmem>>, vector<1x8x256xbf16>
    %8 = vector.shape_cast %7 : vector<1x8x256xbf16> to vector<8x256xbf16>
    %9 = arith.extf %8 : vector<8x256xbf16> to vector<8x256xf32>
    %10 = arith.subf %6, %9 : vector<8x256xf32>
    %11 = arith.mulf %10, %10 : vector<8x256xf32>
    %12 = arith.addf %3, %11 : vector<8x256xf32>
    %c1 = arith.constant 1 : index
    %c0_6 = arith.constant 0 : index
    %c0_7 = arith.constant 0 : index
    %13 = vector.load %arg4[%c1, %c0_6, %c0_7] : memref<3x8x256xbf16, #tpu.memory_space<vmem>>, vector<1x8x256xbf16>
    %14 = vector.shape_cast %13 : vector<1x8x256xbf16> to vector<8x256xbf16>
    %15 = arith.extf %14 : vector<8x256xbf16> to vector<8x256xf32>
    %c1_8 = arith.constant 1 : index
    %c0_9 = arith.constant 0 : index
    %c0_10 = arith.constant 0 : index
    %16 = vector.load %arg5[%c1_8, %c0_9, %c0_10] : memref<3x8x256xbf16, #tpu.memory_space<vmem>>, vector<1x8x256xbf16>
    %17 = vector.shape_cast %16 : vector<1x8x256xbf16> to vector<8x256xbf16>
    %18 = arith.extf %17 : vector<8x256xbf16> to vector<8x256xf32>
    %19 = arith.subf %15, %18 : vector<8x256xf32>
    %20 = arith.mulf %19, %19 : vector<8x256xf32>
    %21 = arith.addf %12, %20 : vector<8x256xf32>
    %c2 = arith.constant 2 : index
    %c0_11 = arith.constant 0 : index
    %c0_12 = arith.constant 0 : index
    %22 = vector.load %arg4[%c2, %c0_11, %c0_12] : memref<3x8x256xbf16, #tpu.memory_space<vmem>>, vector<1x8x256xbf16>
    %23 = vector.shape_cast %22 : vector<1x8x256xbf16> to vector<8x256xbf16>
    %24 = arith.extf %23 : vector<8x256xbf16> to vector<8x256xf32>
    %c2_13 = arith.constant 2 : index
    %c0_14 = arith.constant 0 : index
    %c0_15 = arith.constant 0 : index
    %25 = vector.load %arg5[%c2_13, %c0_14, %c0_15] : memref<3x8x256xbf16, #tpu.memory_space<vmem>>, vector<1x8x256xbf16>
    %26 = vector.shape_cast %25 : vector<1x8x256xbf16> to vector<8x256xbf16>
    %27 = arith.extf %26 : vector<8x256xbf16> to vector<8x256xf32>
    %28 = arith.subf %24, %27 : vector<8x256xf32>
    %29 = arith.mulf %28, %28 : vector<8x256xf32>
    %30 = arith.addf %21, %29 : vector<8x256xf32>
    %31 = math.sqrt %30 : vector<8x256xf32>
    %c256_i32 = arith.constant 256 : i32
    %32 = arith.muli %arg1, %c256_i32 : i32
    %33 = tpu.iota {dimensions = array<i32: 1>} : vector<8x256xi32>
    %34 = vector.broadcast %32 : i32 to vector<8x256xi32>
    %35 = arith.addi %34, %33 : vector<8x256xi32>
    %cst_16 = arith.constant 0.000000e+00 : f32
    %36 = vector.broadcast %cst_16 : f32 to vector<8x256xf32>
    %c-1_i32 = arith.constant -1 : i32
    %37 = vector.broadcast %c-1_i32 : i32 to vector<8x256xi32>
    %c0_17 = arith.constant 0 : index
    %c0_18 = arith.constant 0 : index
    %38 = vector.load %arg2[%c0_17, %c0_18] : memref<8x5xi32, #tpu.memory_space<vmem>>, vector<8x1xi32>
    %c0_19 = arith.constant 0 : index
    %c1_20 = arith.constant 1 : index
    %39 = vector.load %arg2[%c0_19, %c1_20] : memref<8x5xi32, #tpu.memory_space<vmem>>, vector<8x1xi32>
    %40 = arith.subi %39, %38 : vector<8x1xi32>
    %41 = arith.sitofp %40 : vector<8x1xi32> to vector<8x1xf32>
    %cst_21 = arith.constant 0.000000e+00 : f32
    %42 = vector.broadcast %cst_21 : f32 to vector<8x1xf32>
    %43 = arith.cmpf ogt, %41, %42 : vector<8x1xf32>
    %44 = arith.extui %43 : vector<8x1xi1> to vector<8x1xi32>
    %45 = arith.sitofp %44 : vector<8x1xi32> to vector<8x1xf32>
    %cst_22 = arith.constant 1.000000e+00 : f32
    %46 = vector.broadcast %cst_22 : f32 to vector<8x1xf32>
    %47 = arith.maximumf %41, %46 : vector<8x1xf32>
    %48 = arith.divf %45, %47 : vector<8x1xf32>
    %c0_23 = arith.constant 0 : index
    %c0_24 = arith.constant 0 : index
    %49 = vector.load %arg3[%c0_23, %c0_24] : memref<8x4xi32, #tpu.memory_space<vmem>>, vector<8x1xi32>
    %50 = vector.broadcast %38 : vector<8x1xi32> to vector<8x256xi32>
    %51 = arith.cmpi sge, %35, %50 : vector<8x256xi32>
    %52 = vector.broadcast %39 : vector<8x1xi32> to vector<8x256xi32>
    %53 = arith.cmpi slt, %35, %52 : vector<8x256xi32>
    %54 = arith.andi %51, %53 : vector<8x256xi1>
    %55 = vector.shape_cast %48 : vector<8x1xf32> to vector<8x1xf32>
    %56 = vector.broadcast %55 : vector<8x1xf32> to vector<8x256xf32>
    %57 = arith.select %54, %56, %36 : vector<8x256xi1>, vector<8x256xf32>
    %58 = vector.shape_cast %49 : vector<8x1xi32> to vector<8x1xi32>
    %59 = vector.broadcast %58 : vector<8x1xi32> to vector<8x256xi32>
    %60 = arith.select %54, %59, %37 : vector<8x256xi1>, vector<8x256xi32>
    %c0_25 = arith.constant 0 : index
    %c1_26 = arith.constant 1 : index
    %61 = vector.load %arg2[%c0_25, %c1_26] : memref<8x5xi32, #tpu.memory_space<vmem>>, vector<8x1xi32>
    %c0_27 = arith.constant 0 : index
    %c2_28 = arith.constant 2 : index
    %62 = vector.load %arg2[%c0_27, %c2_28] : memref<8x5xi32, #tpu.memory_space<vmem>>, vector<8x1xi32>
    %63 = arith.subi %62, %61 : vector<8x1xi32>
    %64 = arith.sitofp %63 : vector<8x1xi32> to vector<8x1xf32>
    %cst_29 = arith.constant 0.000000e+00 : f32
    %65 = vector.broadcast %cst_29 : f32 to vector<8x1xf32>
    %66 = arith.cmpf ogt, %64, %65 : vector<8x1xf32>
    %67 = arith.extui %66 : vector<8x1xi1> to vector<8x1xi32>
    %68 = arith.sitofp %67 : vector<8x1xi32> to vector<8x1xf32>
    %cst_30 = arith.constant 1.000000e+00 : f32
    %69 = vector.broadcast %cst_30 : f32 to vector<8x1xf32>
    %70 = arith.maximumf %64, %69 : vector<8x1xf32>
    %71 = arith.divf %68, %70 : vector<8x1xf32>
    %c0_31 = arith.constant 0 : index
    %c1_32 = arith.constant 1 : index
    %72 = vector.load %arg3[%c0_31, %c1_32] : memref<8x4xi32, #tpu.memory_space<vmem>>, vector<8x1xi32>
    %73 = vector.broadcast %61 : vector<8x1xi32> to vector<8x256xi32>
    %74 = arith.cmpi sge, %35, %73 : vector<8x256xi32>
    %75 = vector.broadcast %62 : vector<8x1xi32> to vector<8x256xi32>
    %76 = arith.cmpi slt, %35, %75 : vector<8x256xi32>
    %77 = arith.andi %74, %76 : vector<8x256xi1>
    %78 = vector.shape_cast %71 : vector<8x1xf32> to vector<8x1xf32>
    %79 = vector.broadcast %78 : vector<8x1xf32> to vector<8x256xf32>
    %80 = arith.select %77, %79, %57 : vector<8x256xi1>, vector<8x256xf32>
    %81 = vector.shape_cast %72 : vector<8x1xi32> to vector<8x1xi32>
    %82 = vector.broadcast %81 : vector<8x1xi32> to vector<8x256xi32>
    %83 = arith.select %77, %82, %60 : vector<8x256xi1>, vector<8x256xi32>
    %c0_33 = arith.constant 0 : index
    %c2_34 = arith.constant 2 : index
    %84 = vector.load %arg2[%c0_33, %c2_34] : memref<8x5xi32, #tpu.memory_space<vmem>>, vector<8x1xi32>
    %c0_35 = arith.constant 0 : index
    %c3 = arith.constant 3 : index
    %85 = vector.load %arg2[%c0_35, %c3] : memref<8x5xi32, #tpu.memory_space<vmem>>, vector<8x1xi32>
    %86 = arith.subi %85, %84 : vector<8x1xi32>
    %87 = arith.sitofp %86 : vector<8x1xi32> to vector<8x1xf32>
    %cst_36 = arith.constant 0.000000e+00 : f32
    %88 = vector.broadcast %cst_36 : f32 to vector<8x1xf32>
    %89 = arith.cmpf ogt, %87, %88 : vector<8x1xf32>
    %90 = arith.extui %89 : vector<8x1xi1> to vector<8x1xi32>
    %91 = arith.sitofp %90 : vector<8x1xi32> to vector<8x1xf32>
    %cst_37 = arith.constant 1.000000e+00 : f32
    %92 = vector.broadcast %cst_37 : f32 to vector<8x1xf32>
    %93 = arith.maximumf %87, %92 : vector<8x1xf32>
    %94 = arith.divf %91, %93 : vector<8x1xf32>
    %c0_38 = arith.constant 0 : index
    %c2_39 = arith.constant 2 : index
    %95 = vector.load %arg3[%c0_38, %c2_39] : memref<8x4xi32, #tpu.memory_space<vmem>>, vector<8x1xi32>
    %96 = vector.broadcast %84 : vector<8x1xi32> to vector<8x256xi32>
    %97 = arith.cmpi sge, %35, %96 : vector<8x256xi32>
    %98 = vector.broadcast %85 : vector<8x1xi32> to vector<8x256xi32>
    %99 = arith.cmpi slt, %35, %98 : vector<8x256xi32>
    %100 = arith.andi %97, %99 : vector<8x256xi1>
    %101 = vector.shape_cast %94 : vector<8x1xf32> to vector<8x1xf32>
    %102 = vector.broadcast %101 : vector<8x1xf32> to vector<8x256xf32>
    %103 = arith.select %100, %102, %80 : vector<8x256xi1>, vector<8x256xf32>
    %104 = vector.shape_cast %95 : vector<8x1xi32> to vector<8x1xi32>
    %105 = vector.broadcast %104 : vector<8x1xi32> to vector<8x256xi32>
    %106 = arith.select %100, %105, %83 : vector<8x256xi1>, vector<8x256xi32>
    %c0_40 = arith.constant 0 : index
    %c3_41 = arith.constant 3 : index
    %107 = vector.load %arg2[%c0_40, %c3_41] : memref<8x5xi32, #tpu.memory_space<vmem>>, vector<8x1xi32>
    %c0_42 = arith.constant 0 : index
    %c4 = arith.constant 4 : index
    %108 = vector.load %arg2[%c0_42, %c4] : memref<8x5xi32, #tpu.memory_space<vmem>>, vector<8x1xi32>
    %109 = arith.subi %108, %107 : vector<8x1xi32>
    %110 = arith.sitofp %109 : vector<8x1xi32> to vector<8x1xf32>
    %cst_43 = arith.constant 0.000000e+00 : f32
    %111 = vector.broadcast %cst_43 : f32 to vector<8x1xf32>
    %112 = arith.cmpf ogt, %110, %111 : vector<8x1xf32>
    %113 = arith.extui %112 : vector<8x1xi1> to vector<8x1xi32>
    %114 = arith.sitofp %113 : vector<8x1xi32> to vector<8x1xf32>
    %cst_44 = arith.constant 1.000000e+00 : f32
    %115 = vector.broadcast %cst_44 : f32 to vector<8x1xf32>
    %116 = arith.maximumf %110, %115 : vector<8x1xf32>
    %117 = arith.divf %114, %116 : vector<8x1xf32>
    %c0_45 = arith.constant 0 : index
    %c3_46 = arith.constant 3 : index
    %118 = vector.load %arg3[%c0_45, %c3_46] : memref<8x4xi32, #tpu.memory_space<vmem>>, vector<8x1xi32>
    %119 = vector.broadcast %107 : vector<8x1xi32> to vector<8x256xi32>
    %120 = arith.cmpi sge, %35, %119 : vector<8x256xi32>
    %121 = vector.broadcast %108 : vector<8x1xi32> to vector<8x256xi32>
    %122 = arith.cmpi slt, %35, %121 : vector<8x256xi32>
    %123 = arith.andi %120, %122 : vector<8x256xi1>
    %124 = vector.shape_cast %117 : vector<8x1xf32> to vector<8x1xf32>
    %125 = vector.broadcast %124 : vector<8x1xf32> to vector<8x256xf32>
    %126 = arith.select %123, %125, %103 : vector<8x256xi1>, vector<8x256xf32>
    %127 = vector.shape_cast %118 : vector<8x1xi32> to vector<8x1xi32>
    %128 = vector.broadcast %127 : vector<8x1xi32> to vector<8x256xi32>
    %129 = arith.select %123, %128, %106 : vector<8x256xi1>, vector<8x256xi32>
    %130 = arith.mulf %31, %126 : vector<8x256xf32>
    %131 = tpu.iota {dimensions = array<i32: 1>} : vector<1x128xi32>
    %cst_47 = arith.constant 0.000000e+00 : f32
    %132 = vector.broadcast %cst_47 : f32 to vector<1x128xf32>
    %c0_i32_48 = arith.constant 0 : i32
    %133 = vector.broadcast %c0_i32_48 : i32 to vector<8x256xi32>
    %134 = arith.cmpi eq, %129, %133 : vector<8x256xi32>
    %cst_49 = arith.constant 0.000000e+00 : f32
    %135 = vector.broadcast %cst_49 : f32 to vector<8x256xf32>
    %136 = arith.select %134, %130, %135 : vector<8x256xi1>, vector<8x256xf32>
    %137 = vector.shape_cast %136 : vector<8x256xf32> to vector<1x8x256xf32>
    %cst_50 = arith.constant dense<0.000000e+00> : vector<1xf32>
    %138 = vector.multi_reduction <add>, %137, %cst_50 [1, 2] : vector<1x8x256xf32> to vector<1xf32>
    %139 = vector.shape_cast %138 : vector<1xf32> to vector<1x1x1xf32>
    %140 = vector.extract %139[0, 0, 0] : f32 from vector<1x1x1xf32>
    %c0_i32_51 = arith.constant 0 : i32
    %141 = vector.broadcast %c0_i32_51 : i32 to vector<1x128xi32>
    %142 = arith.cmpi eq, %131, %141 : vector<1x128xi32>
    %143 = arith.extui %142 : vector<1x128xi1> to vector<1x128xi32>
    %144 = arith.sitofp %143 : vector<1x128xi32> to vector<1x128xf32>
    %145 = vector.broadcast %140 : f32 to vector<1x128xf32>
    %146 = arith.mulf %145, %144 : vector<1x128xf32>
    %147 = arith.addf %132, %146 : vector<1x128xf32>
    %c1_i32 = arith.constant 1 : i32
    %148 = vector.broadcast %c1_i32 : i32 to vector<8x256xi32>
    %149 = arith.cmpi eq, %129, %148 : vector<8x256xi32>
    %cst_52 = arith.constant 0.000000e+00 : f32
    %150 = vector.broadcast %cst_52 : f32 to vector<8x256xf32>
    %151 = arith.select %149, %130, %150 : vector<8x256xi1>, vector<8x256xf32>
    %152 = vector.shape_cast %151 : vector<8x256xf32> to vector<1x8x256xf32>
    %cst_53 = arith.constant dense<0.000000e+00> : vector<1xf32>
    %153 = vector.multi_reduction <add>, %152, %cst_53 [1, 2] : vector<1x8x256xf32> to vector<1xf32>
    %154 = vector.shape_cast %153 : vector<1xf32> to vector<1x1x1xf32>
    %155 = vector.extract %154[0, 0, 0] : f32 from vector<1x1x1xf32>
    %c1_i32_54 = arith.constant 1 : i32
    %156 = vector.broadcast %c1_i32_54 : i32 to vector<1x128xi32>
    %157 = arith.cmpi eq, %131, %156 : vector<1x128xi32>
    %158 = arith.extui %157 : vector<1x128xi1> to vector<1x128xi32>
    %159 = arith.sitofp %158 : vector<1x128xi32> to vector<1x128xf32>
    %160 = vector.broadcast %155 : f32 to vector<1x128xf32>
    %161 = arith.mulf %160, %159 : vector<1x128xf32>
    %162 = arith.addf %147, %161 : vector<1x128xf32>
    %c2_i32 = arith.constant 2 : i32
    %163 = vector.broadcast %c2_i32 : i32 to vector<8x256xi32>
    %164 = arith.cmpi eq, %129, %163 : vector<8x256xi32>
    %cst_55 = arith.constant 0.000000e+00 : f32
    %165 = vector.broadcast %cst_55 : f32 to vector<8x256xf32>
    %166 = arith.select %164, %130, %165 : vector<8x256xi1>, vector<8x256xf32>
    %167 = vector.shape_cast %166 : vector<8x256xf32> to vector<1x8x256xf32>
    %cst_56 = arith.constant dense<0.000000e+00> : vector<1xf32>
    %168 = vector.multi_reduction <add>, %167, %cst_56 [1, 2] : vector<1x8x256xf32> to vector<1xf32>
    %169 = vector.shape_cast %168 : vector<1xf32> to vector<1x1x1xf32>
    %170 = vector.extract %169[0, 0, 0] : f32 from vector<1x1x1xf32>
    %c2_i32_57 = arith.constant 2 : i32
    %171 = vector.broadcast %c2_i32_57 : i32 to vector<1x128xi32>
    %172 = arith.cmpi eq, %131, %171 : vector<1x128xi32>
    %173 = arith.extui %172 : vector<1x128xi1> to vector<1x128xi32>
    %174 = arith.sitofp %173 : vector<1x128xi32> to vector<1x128xf32>
    %175 = vector.broadcast %170 : f32 to vector<1x128xf32>
    %176 = arith.mulf %175, %174 : vector<1x128xf32>
    %177 = arith.addf %162, %176 : vector<1x128xf32>
    %c3_i32 = arith.constant 3 : i32
    %178 = vector.broadcast %c3_i32 : i32 to vector<8x256xi32>
    %179 = arith.cmpi eq, %129, %178 : vector<8x256xi32>
    %cst_58 = arith.constant 0.000000e+00 : f32
    %180 = vector.broadcast %cst_58 : f32 to vector<8x256xf32>
    %181 = arith.select %179, %130, %180 : vector<8x256xi1>, vector<8x256xf32>
    %182 = vector.shape_cast %181 : vector<8x256xf32> to vector<1x8x256xf32>
    %cst_59 = arith.constant dense<0.000000e+00> : vector<1xf32>
    %183 = vector.multi_reduction <add>, %182, %cst_59 [1, 2] : vector<1x8x256xf32> to vector<1xf32>
    %184 = vector.shape_cast %183 : vector<1xf32> to vector<1x1x1xf32>
    %185 = vector.extract %184[0, 0, 0] : f32 from vector<1x1x1xf32>
    %c3_i32_60 = arith.constant 3 : i32
    %186 = vector.broadcast %c3_i32_60 : i32 to vector<1x128xi32>
    %187 = arith.cmpi eq, %131, %186 : vector<1x128xi32>
    %188 = arith.extui %187 : vector<1x128xi1> to vector<1x128xi32>
    %189 = arith.sitofp %188 : vector<1x128xi32> to vector<1x128xf32>
    %190 = vector.broadcast %185 : f32 to vector<1x128xf32>
    %191 = arith.mulf %190, %189 : vector<1x128xf32>
    %192 = arith.addf %177, %191 : vector<1x128xf32>
    %c0_61 = arith.constant 0 : index
    %c0_62 = arith.constant 0 : index
    %c0_63 = arith.constant 0 : index
    %193 = vector.load %arg6[%c0_61, %c0_62, %c0_63] : memref<1x1x128xf32, #tpu.memory_space<vmem>>, vector<1x1x128xf32>
    %194 = vector.shape_cast %192 : vector<1x128xf32> to vector<1x1x128xf32>
    %195 = arith.addf %193, %194 : vector<1x1x128xf32>
    %c0_64 = arith.constant 0 : index
    %c0_65 = arith.constant 0 : index
    %c0_66 = arith.constant 0 : index
    %196 = vector.load %arg6[%c0_64, %c0_65, %c0_66] : memref<1x1x128xf32, #tpu.memory_space<vmem>>, vector<1x1x128xf32>
    tpu.vector_store %arg6[%c0_64, %c0_65, %c0_66], %195 {strides = array<i32>} : memref<1x1x128xf32, #tpu.memory_space<vmem>>, vector<1x1x128xf32>,
    return
  }
  func.func @transform_0(%arg0: i32, %arg1: i32) -> (i32, i32) {
    %c0_i32 = arith.constant 0 : i32
    %c0_i32_0 = arith.constant 0 : i32
    return %arg0, %c0_i32 : i32, i32
  }
  func.func @transform_1(%arg0: i32, %arg1: i32) -> (i32, i32) {
    %c0_i32 = arith.constant 0 : i32
    %c0_i32_0 = arith.constant 0 : i32
    return %arg0, %c0_i32 : i32, i32
  }
  func.func @transform_2(%arg0: i32, %arg1: i32) -> (i32, i32, i32) {
    %c0_i32 = arith.constant 0 : i32
    %c0_i32_0 = arith.constant 0 : i32
    return %c0_i32, %arg0, %arg1 : i32, i32, i32
  }
  func.func @transform_3(%arg0: i32, %arg1: i32) -> (i32, i32, i32) {
    %c0_i32 = arith.constant 0 : i32
    %c0_i32_0 = arith.constant 0 : i32
    return %c0_i32, %arg0, %arg1 : i32, i32, i32
  }
  func.func @transform_4(%arg0: i32, %arg1: i32) -> (i32, i32, i32) {
    %c0_i32 = arith.constant 0 : i32
    %c0_i32_0 = arith.constant 0 : i32
    %c0_i32_1 = arith.constant 0 : i32
    return %arg0, %c0_i32, %c0_i32_0 : i32, i32, i32
  }
}

</mosaic_0001>

<bundles_post_ra>
// kernel: tpu_custom_call.1
= control target key start
LH: loop header
LB: loop body
LE: loop exit
PB: predicated region body
PF: predicated region fallthrough
CT: control target
= control target key end

     0   :  { %9 = vsyncpa [#allocation3], 0  ;;  %s589_s0 = inlined_call_operand.vmem [shape: s32[8,5], index: 0, kind: input, shape index: {}]   ;;  %s590_s1 = inlined_call_operand.vmem [shape: s32[8,4], index: 1, kind: input, shape index: {}]   ;;  %s591_s2 = inlined_call_operand.hbm [shape: bf16[3,8,256], index: 2, kind: input, shape index: {}]   ;;  %s592_s3 = inlined_call_operand.hbm [shape: bf16[3,8,256], index: 3, kind: input, shape index: {}]   ;;  %s593_s4 = inlined_call_operand.hbm [shape: f32[1,1,128], index: 4, kind: output, shape index: {}]  }
   0x1   :  { %10 = vsyncpa [#allocation6], 0 }
   0x2   :  { %11 = vsyncpa [#allocation4], 0  ;;  %s419_s15 = smov [#allocation2]  }
   0x3   :  { %s21_s16 = sshll.u32 %s419_s15, 4  ;;  %s22_s16 = int_to_ptr.vmem [resolvable:$true] %s21_s16 }
   0x4   :  { %s361_s17 = scalar_lea.vmem %s22_s16, 384  ;;  %p366_p1 = scmp.lt.s32.totalorder %s22_s16, %s22_s16 }
   0x5   :  { %p362_p0 = scmp.ne.s32.totalorder %s22_s16, %s361_s17  ;;  %p367_p2 = scmp.lt.s32.totalorder %s361_s17, %s361_s17 }
   0x7   :  { %p368_p3 = por %p367_p2, %p366_p1 }
   0x9   :  { %p369_p4 = pnand %p368_p3, %p362_p0 }
   0xb   :  { %372 = shalt.err (!%p369_p4)
}
   0xc   :  { %s420_s18 = smov 128   ;;  %s421_s19 = smov 8  }
   0xd   :  { %27 = dma.hbm_to_vmem [thread:$0]  %s591_s2, 384, %s22_s16, [#allocation3], %s420_s18, %s420_s18, %s421_s19  }
   0xe   :  { %s422_s22 = smov [#allocation5]  }
   0xf   :  { %s33_s23 = sshll.u32 %s422_s22, 4  ;;  %s34_s23 = int_to_ptr.vmem [resolvable:$true] %s33_s23 }
  0x10   :  { %s381_s24 = scalar_lea.vmem %s34_s23, 384  ;;  %p386_p6 = scmp.lt.s32.totalorder %s34_s23, %s34_s23 }
  0x11   :  { %p382_p5 = scmp.ne.s32.totalorder %s34_s23, %s381_s24  ;;  %p387_p7 = scmp.lt.s32.totalorder %s381_s24, %s381_s24 }
  0x13   :  { %p388_p8 = por %p387_p7, %p386_p6 }
  0x15   :  { %p389_p9 = pnand %p388_p8, %p382_p5 }
  0x17   :  { %392 = shalt.err (!%p389_p9)
}
  0x18   :  { %39 = dma.hbm_to_vmem [thread:$0]  %s592_s3, 384, %s34_s23, [#allocation6], %s420_s18, %s420_s18, %s421_s19  }
  0x19   :  { %413 = dma.done.wait [#allocation3], 384  }
  0x1a   :  { %414 = vsyncadd [#allocation3], 4294966912 }
  0x1b   :  { %415 = dma.done.wait [#allocation6], 384  }
  0x1c   :  { %416 = vsyncadd [#allocation6], 4294966912  ;;  %v423_v0 = vmov 0.0   ;;  %v424_v1 = vmov 1   ;;  %v425_v2 = vmov 0   ;;  %v112_v3 = vld [vmem:[%s589_s0] sm:$0xff]  ;;  %v106_v52 = vlaneseq }
  0x1d   :  { %50 = vst [vmem:[#allocation7] sm:$0x1] %v423_v0  ;;  %335 = vset.pattern.permute.xlu1 %v424_v1  ;;  %334 = vset.pattern.permute.xlu0 %v425_v2  ;;  %s426_s28 = smov 1   ;;  %v427_v4 = vmov 2   ;;  %v123_v5 = vld [vmem:[%s590_s1] sm:$0xff]  ;;  %v428_v6 = vmov 3  }
  0x1e   :  { %113 = vrot.lane.b32.xlu0 %v112_v3, %s426_s28  ;;  %130 = vperm.xlu1 %335, %v112_v3   ;;  %v429_v7 = vmov 4   ;;  %v51_v15 = vld [vmem:[#allocation2] sm:$0xff]  ;;  %v54_v16 = vld [vmem:[#allocation5] sm:$0xff]  ;;  %v64_v17 = vld [vmem:[#allocation2 + $0x8] sm:$0xff]  ;;  %v476_v54 = vand.u32 127, %v106_v52  ;;  %s430_s6 = smov [#allocation7]  }
  0x1f   :  { %v68_v18 = vld [vmem:[#allocation5 + $0x8] sm:$0xff]  ;;  %v52_v19 = vunpack.c.l.bf16 %v51_v15  ;;  %v55_v20 = vunpack.c.l.bf16 %v54_v16  ;;  %v65_v21 = vunpack.c.l.bf16 %v64_v17  ;;  %v53_v23 = vunpack.c.h.bf16 %v51_v15  ;;  %v78_v27 = vld [vmem:[#allocation2 + $0x10] sm:$0xff]  ;;  %v82_v28 = vld [vmem:[#allocation5 + $0x10] sm:$0xff]  ;;  %s299_s7 = sshll.u32 %s430_s6, 4  ;;  %s300_s7 = int_to_ptr.vmem [resolvable:$true] %s299_s7 }
  0x20   :  { %v69_v22 = vunpack.c.l.bf16 %v68_v18  ;;  %v56_v24 = vunpack.c.h.bf16 %v54_v16  ;;  %v66_v25 = vunpack.c.h.bf16 %v64_v17  ;;  %v70_v26 = vunpack.c.h.bf16 %v68_v18  ;;  %s393_s8 = scalar_lea.vmem %s300_s7, 16  ;;  %s397_s9 = scalar_lea.vmem %s300_s7, 32 }
  0x21   :  { %v57_v30 = vsub.f32 %v52_v19, %v55_v20  ;;  %v79_v32 = vunpack.c.l.bf16 %v78_v27  ;;  %v83_v33 = vunpack.c.l.bf16 %v82_v28  ;;  %v80_v36 = vunpack.c.h.bf16 %v78_v27  ;;  %p394_p10 = scmp.ne.s32.totalorder %s300_s7, %s393_s8  ;;  %p398_p11 = scmp.lt.s32.totalorder %s300_s7, %s300_s7 }
  0x22   :  { %125 = vperm.xlu0 %334, %v112_v3   ;;  %336 = vset.pattern.permute.xlu1 %v427_v4  ;;  %v71_v31 = vsub.f32 %v65_v21, %v69_v22  ;;  %v58_v34 = vsub.f32 %v53_v23, %v56_v24  ;;  %v72_v35 = vsub.f32 %v66_v25, %v70_v26  ;;  %v84_v37 = vunpack.c.h.bf16 %v82_v28  ;;  %p399_p12 = scmp.lt.s32.totalorder %s397_s9, %s393_s8 }
  0x23   :  { %151 = vperm.xlu1 %336, %v112_v3   ;;  %v59_v38 = vmul.f32 %v57_v30, %v57_v30  ;;  %v85_v40 = vsub.f32 %v79_v32, %v83_v33  ;;  %v108_v57 = vadd.s32 128, %v476_v54 }
  0x24   :  { %v73_v39 = vmul.f32 %v71_v31, %v71_v31  ;;  %v60_v41 = vmul.f32 %v58_v34, %v58_v34  ;;  %v74_v42 = vmul.f32 %v72_v35, %v72_v35  ;;  %v86_v43 = vsub.f32 %v80_v36, %v84_v37  ;;  %p400_p13 = por %p399_p12, %p398_p11 }
  0x25   :  { %v87_v46 = vmul.f32 %v85_v40, %v85_v40 }
  0x26   :  { %337 = vset.pattern.permute.xlu0 %v428_v6  ;;  %v75_v45 = vadd.f32 %v73_v39, %v59_v38  ;;  %v76_v47 = vadd.f32 %v74_v42, %v60_v41  ;;  %v88_v48 = vmul.f32 %v86_v43, %v86_v43  ;;  %p401_p0 = pnand %p400_p13, %p394_p10 }
  0x27   :  { %171 = vperm.xlu0 %337, %v112_v3   ;;  %338 = vset.pattern.permute.xlu1 %v425_v2 }
  0x28   :  { %144 = vperm.xlu1 %338, %v123_v5   ;;  %v470_v50 = vadd.f32 %v87_v46, %v75_v45  ;;  %v472_v51 = vadd.f32 %v88_v48, %v76_v47 }
  0x2a   :  { %vm95_vm15 = vcmp.eq.f32.partialorder %v470_v50, 0.0 }
  0x2b   :  { %339 = vset.pattern.permute.xlu0 %v429_v7 }
  0x2c   :  { %191 = vperm.xlu0 %339, %v112_v3   ;;  %340 = vset.pattern.permute.xlu1 %v424_v1 }
  0x2d   :  { %164 = vperm.xlu1 %340, %v123_v5  }
  0x30   :  { %341 = vset.pattern.permute.xlu0 %v427_v4 }
  0x31   :  { %184 = vperm.xlu0 %341, %v123_v5  }
  0x35   :  { %346 = vset.pattern.permute.xlu0 %v428_v6 }
  0x90   :  { %v114_v8 = vpop.permute.xlu0 %113 }
  0x91   :  { %v115_v9 = vsub.s32 %v112_v3, %v114_v8 }
  0x93   :  { %v116_v10 = vcvt.s32.f32 %v115_v9 }
  0x95   :  { %v120_v11 = vmax.f32 %v116_v10, 1.0  ;;  %vm117_vm0 = vcmp.gt.f32.partialorder %v116_v10, 0.0  ;;  %v96_v10 = vand.u32 2147483648, %v470_v50 }
  0x96   :  { %v309_v13 = vsel %vm117_vm0, 1.0, %v423_v0 }
  0x97   :  { %347 = vrcp.f32 %v120_v11  ;;  %v103_v11 = vand.u32 2147483648, %v472_v51 }
  0x98   :  { %349 = vrsqrt.f32 %v470_v50 }
  0x99   :  { %v131_v29 = vpop.permute.xlu1 %130  ;;  %351 = vrsqrt.f32 %v472_v51 }
  0x9a   :  { %vm132_vm2 = vcmp.lt.s32.totalorder %v476_v54, %v131_v29  ;;  %vm133_vm4 = vcmp.lt.s32.totalorder %v108_v57, %v131_v29  ;;  %vm148_vm6 = vcmp.ge.s32.totalorder %v476_v54, %v131_v29  ;;  %vm149_vm9 = vcmp.ge.s32.totalorder %v108_v57, %v131_v29 }
  0x9d   :  { %v126_v55 = vpop.permute.xlu0 %125 }
  0x9e   :  { %v152_v44 = vpop.permute.xlu1 %151  ;;  %vm127_vm1 = vcmp.ge.s32.totalorder %v476_v54, %v126_v55  ;;  %vm128_vm3 = vcmp.ge.s32.totalorder %v108_v57, %v126_v55 }
  0x9f   :  { %vm481_vm5 = vmand %vm127_vm1, %vm132_vm2  ;;  %vm153_vm7 = vcmp.lt.s32.totalorder %v476_v54, %v152_v44  ;;  %vm154_vm10 = vcmp.lt.s32.totalorder %v108_v57, %v152_v44  ;;  %vm168_vm11 = vcmp.ge.s32.totalorder %v476_v54, %v152_v44  ;;  %vm169_vm12 = vcmp.ge.s32.totalorder %v108_v57, %v152_v44 }
  0xa0   :  { %vm487_vm8 = vmand %vm128_vm3, %vm133_vm4  ;;  %vm93_vm2 = vcmp.eq.f32.partialorder %v470_v50, inf  ;;  %vm102_vm3 = vcmp.eq.f32.partialorder %v472_v51, 0.0 }
  0xa1   :  { %vm496_vm0 = vmand %vm148_vm6, %vm153_vm7 }
  0xa2   :  { %v172_v58 = vpop.permute.xlu0 %171  ;;  %vm509_vm6 = vmand %vm149_vm9, %vm154_vm10  ;;  %vm606_vm9 = vcmp.eq.f32.partialorder %v472_v51, inf }
  0xa3   :  { %v145_v49 = vpop.permute.xlu1 %144  ;;  %vm173_vm14 = vcmp.lt.s32.totalorder %v476_v54, %v172_v58  ;;  %vm174_vm1 = vcmp.lt.s32.totalorder %v108_v57, %v172_v58  ;;  %vm607_vm10 = vcmp.ge.s32.totalorder %v476_v54, %v172_v58 }
  0xa4   :  { %v348_v12 = vpop.eup %347  ;;  %vm515_vm7 = vmand %vm168_vm11, %vm173_vm14 }
  0xa5   :  { %v122_v14 = vmul.f32 %v348_v12, %v309_v13  ;;  %v350_v60 = vpop.eup %349  ;;  %vm524_vm13 = vmand %vm169_vm12, %vm174_vm1 }
  0xa6   :  { %v352_v61 = vpop.eup %351  ;;  %v92_v3 = vmul.f32 %v350_v60, %v470_v50 }
  0xa7   :  { %138 = vperm.xlu1 %340, %v122_v14   ;;  %v192_v2 = vpop.permute.xlu0 %191 }
  0xa8   :  { %v165_v53 = vpop.permute.xlu1 %164  ;;  %vm193_vm4 = vcmp.lt.s32.totalorder %v476_v54, %v192_v2  ;;  %v94_v16 = vsel %vm93_vm2, %v470_v50, %v92_v3 }
  0xa9   :  { %vm540_vm11 = vmand %vm607_vm10, %vm193_vm4  ;;  %v97_v27 = vsel %vm95_vm15, %v96_v10, %v94_v16  ;;  %vm284_vm10 = vcmp.eq.s32.totalorder %v476_v54, 3 }
  0xab   :  { %342 = vset.pattern.permute.xlu1 %v427_v4  ;;  %v99_v4 = vmul.f32 %v352_v61, %v472_v51 }
  0xac   :  { %158 = vperm.xlu1 %342, %v122_v14   ;;  %v185_v24 = vpop.permute.xlu0 %184 }
  0xad   :  { %v101_v17 = vsel %vm606_vm9, %v472_v51, %v99_v4  ;;  %vm264_vm9 = vcmp.eq.s32.totalorder %v476_v54, 2 }
  0xae   :  { %v104_v28 = vsel %vm102_vm3, %v103_v11, %v101_v17 }
  0xb0   :  { %343 = vset.pattern.permute.xlu1 %v428_v6 }
  0xb1   :  { %178 = vperm.xlu1 %343, %v122_v14  }
  0xb5   :  { %344 = vset.pattern.permute.xlu1 %v429_v7  ;;  %v147_v7 = vsel %vm487_vm8, %v145_v49, 4294967295 }
  0xb6   :  { %198 = vperm.xlu1 %344, %v122_v14   ;;  %v167_v23 = vsel %vm509_vm6, %v165_v53, %v147_v7 }
  0xb7   :  { %v187_v32 = vsel %vm524_vm13, %v185_v24, %v167_v23 }
  0xba   :  { %345 = vset.pattern.permute.xlu1 %v428_v6  ;;  %v146_v6 = vsel %vm481_vm5, %v145_v49, 4294967295 }
  0xbb   :  { %204 = vperm.xlu1 %345, %v123_v5   ;;  %v166_v22 = vsel %vm496_vm0, %v165_v53, %v146_v6 }
  0xbc   :  { %v186_v31 = vsel %vm515_vm7, %v185_v24, %v166_v22 }
 0x122   :  { %v139_v56 = vpop.permute.xlu1 %138 }
 0x123   :  { %v141_v13 = vsel %vm481_vm5, %v139_v56, 0.0  ;;  %v142_v14 = vsel %vm487_vm8, %v139_v56, 0.0  ;;  %vm610_vm5 = vcmp.lt.s32.totalorder %v108_v57, %v192_v2  ;;  %vm611_vm8 = vcmp.ge.s32.totalorder %v108_v57, %v172_v58 }
 0x124   :  { %vm550_vm12 = vmand %vm611_vm8, %vm610_vm5 }
 0x127   :  { %v159_v59 = vpop.permute.xlu1 %158 }
 0x128   :  { %v161_v19 = vsel %vm496_vm0, %v159_v59, %v141_v13  ;;  %v162_v20 = vsel %vm509_vm6, %v159_v59, %v142_v14  ;;  %vm224_vm6 = vcmp.eq.s32.totalorder %v476_v54, 0 }
 0x129   :  { %v310_v16 = vsel %vm224_vm6, 1.0, %v423_v0 }
 0x12c   :  { %v179_v1 = vpop.permute.xlu1 %178 }
 0x12d   :  { %v181_v25 = vsel %vm515_vm7, %v179_v1, %v161_v19  ;;  %v182_v26 = vsel %vm524_vm13, %v179_v1, %v162_v20  ;;  %vm244_vm7 = vcmp.eq.s32.totalorder %v476_v54, 1  ;;  %v312_v20 = vsel %vm264_vm9, 1.0, %v423_v0 }
 0x12e   :  { %v311_v18 = vsel %vm244_vm7, 1.0, %v423_v0 }
 0x131   :  { %v199_v15 = vpop.permute.xlu1 %198 }
 0x132   :  { %v201_v29 = vsel %vm540_vm11, %v199_v15, %v181_v25  ;;  %v202_v30 = vsel %vm550_vm12, %v199_v15, %v182_v26  ;;  %v313_v25 = vsel %vm284_vm10, 1.0, %v423_v0 }
 0x133   :  { %v208_v34 = vmul.f32 %v201_v29, %v97_v27  ;;  %v209_v35 = vmul.f32 %v202_v30, %v104_v28  ;;  %v290_v30 = vld [vmem:[#allocation7] sm:$0x1] }
 0x136   :  { %v205_v33 = vpop.permute.xlu1 %204 }
 0x137   :  { %v206_v36 = vsel %vm540_vm11, %v205_v33, %v186_v31  ;;  %v207_v37 = vsel %vm550_vm12, %v205_v33, %v187_v32 }
 0x138   :  { %vm230_vm14 = vcmp.eq.s32.totalorder %v206_v36, 1  ;;  %vm231_vm15 = vcmp.eq.s32.totalorder %v207_v37, 1  ;;  %vm210_vm0 = vcmp.eq.s32.totalorder %v206_v36, 0  ;;  %vm211_vm1 = vcmp.eq.s32.totalorder %v207_v37, 0 }
 0x139   :  { %v232_v38 = vsel %vm230_vm14, %v208_v34, 0.0  ;;  %v233_v39 = vsel %vm231_vm15, %v209_v35, 0.0  ;;  %v212_v40 = vsel %vm210_vm0, %v208_v34, 0.0  ;;  %v213_v41 = vsel %vm211_vm1, %v209_v35, 0.0 }
 0x13a   :  { %v234_v42 = vadd.f32 %v233_v39, %v232_v38  ;;  %v214_v43 = vadd.f32 %v213_v41, %v212_v40  ;;  %vm250_vm13 = vcmp.eq.s32.totalorder %v206_v36, 2  ;;  %vm251_vm2 = vcmp.eq.s32.totalorder %v207_v37, 2 }
 0x13b   :  { %v252_v44 = vsel %vm250_vm13, %v208_v34, 0.0  ;;  %v253_v45 = vsel %vm251_vm2, %v209_v35, 0.0  ;;  %vm270_vm3 = vcmp.eq.s32.totalorder %v206_v36, 3  ;;  %vm271_vm4 = vcmp.eq.s32.totalorder %v207_v37, 3 }
 0x13c   :  { %235 = vadd.xlane.f32.xlu1 %v234_v42  ;;  %215 = vadd.xlane.f32.xlu0 %v214_v43  ;;  %v254_v46 = vadd.f32 %v253_v45, %v252_v44  ;;  %v272_v47 = vsel %vm270_vm3, %v208_v34, 0.0  ;;  %v273_v48 = vsel %vm271_vm4, %v209_v35, 0.0 }
 0x13d   :  { %v274_v49 = vadd.f32 %v273_v48, %v272_v47 }
 0x140   :  { %255 = vadd.xlane.f32.xlu0 %v254_v46 }
 0x144   :  { %275 = vadd.xlane.f32.xlu0 %v274_v49 }
 0x1c5   :  { %v236_v50 = vpop.xlane.xlu1 %235  ;;  %v216_v51 = vpop.xlane.xlu0 %215 }
 0x1c6   :  { %v237_v52 = vrot.slane %v236_v50, 4  ;;  %v217_v53 = vrot.slane %v216_v51, 4 }
 0x1c8   :  { %v238_v55 = vadd.f32 %v237_v52, %v236_v50  ;;  %v218_v56 = vadd.f32 %v217_v53, %v216_v51 }
 0x1c9   :  { %v256_v57 = vpop.xlane.xlu0 %255 }
 0x1ca   :  { %v239_v58 = vrot.slane %v238_v55, 2  ;;  %v219_v59 = vrot.slane %v218_v56, 2  ;;  %v257_v60 = vrot.slane %v256_v57, 4 }
 0x1cc   :  { %v240_v61 = vadd.f32 %v239_v58, %v238_v55  ;;  %v258_v62 = vadd.f32 %v257_v60, %v256_v57  ;;  %v220_v63 = vadd.f32 %v219_v59, %v218_v56 }
 0x1cd   :  { %v276_v1 = vpop.xlane.xlu0 %275 }
 0x1ce   :  { %v259_v2 = vrot.slane %v258_v62, 2  ;;  %v277_v3 = vrot.slane %v276_v1, 4  ;;  %v221_v4 = vrot.slane %v220_v63, 1  ;;  %v241_v5 = vrot.slane %v240_v61, 1 }
 0x1d0   :  { %v278_v6 = vadd.f32 %v277_v3, %v276_v1  ;;  %v222_v7 = vadd.f32 %v221_v4, %v220_v63  ;;  %v242_v8 = vadd.f32 %v241_v5, %v240_v61  ;;  %v260_v9 = vadd.f32 %v259_v2, %v258_v62 }
 0x1d2   :  { %v279_v10 = vrot.slane %v278_v6, 2  ;;  %314 = vpush %v222_v7  ;;  %v261_v11 = vrot.slane %v260_v9, 1 }
 0x1d3   :  { %316 = vpush %v242_v8 }
 0x1d4   :  { %v280_v12 = vadd.f32 %v279_v10, %v278_v6  ;;  %v262_v13 = vadd.f32 %v261_v11, %v260_v9 }
 0x1d6   :  { %318 = vpush %v262_v13  ;;  %v281_v14 = vrot.slane %v280_v12, 1 }
 0x1d8   :  { %v282_v15 = vadd.f32 %v281_v14, %v280_v12 }
 0x1da   :  { %320 = vpush %v282_v15 }
 0x203   :  { %s315_s0 = spop %314 }
 0x204   :  { %v227_v17 = vstv %s315_s0  ;;  %s317_s1 = spop %316 }
 0x205   :  { %v247_v19 = vstv %s317_s1  ;;  %v228_v21 = vmul.f32 %v310_v16, %v227_v17 }
 0x206   :  { %v248_v22 = vmul.f32 %v311_v18, %v247_v19 }
 0x207   :  { %s319_s30 = spop %318 }
 0x208   :  { %v267_v23 = vstv %s319_s30  ;;  %v249_v26 = vadd.f32 %v248_v22, %v228_v21 }
 0x209   :  { %v268_v24 = vmul.f32 %v312_v20, %v267_v23 }
 0x20b   :  { %s321_s5 = spop %320  ;;  %v269_v28 = vadd.f32 %v268_v24, %v249_v26 }
 0x20c   :  { %v287_v27 = vstv %s321_s5 }
 0x20d   :  { %v288_v29 = vmul.f32 %v313_v25, %v287_v27 }
 0x20f   :  { %v289_v31 = vadd.f32 %v288_v29, %v269_v28 }
 0x211   :  { %v291_v32 = vadd.f32 %v290_v30, %v289_v31 }
 0x213   :  { %292 = vst [vmem:[#allocation7] sm:$0x1] %v291_v32 }
 0x214   :  { %404 = shalt.err (!%p401_p0)
}
 0x215   :  { %302 = dma.vmem_to_hbm [thread:$0]  %s300_s7, 16, %s593_s4, [#allocation4]  }
 0x216   :  { %417 = dma.done.wait [#allocation4], 16  }
 0x217   :  { %418 = vsyncadd [#allocation4], 4294967280 }
 0x218   :  { %306 = vsyncpa [#allocation3], 1 }
 0x219   :  { %307 = vsyncpa [#allocation6], 1 }
 0x21a   :  { %308 = vsyncpa [#allocation4], 1 }

</bundles_post_ra>
